<compile_context>
chip_gen: v7x
topology: tpu7x:2x2x1
jax: 0.10.0
libtpu: 0.0.40
codegen_flags: <defaults>
</compile_context>

<pallas_src>
import jax
import jax.numpy as jnp
from jax.experimental import pallas as pl
from jax.experimental.pallas import tpu as pltpu

NEG_SLOPE = 0.01      # F.leaky_relu default negative_slope
LANE = 128
SUBLANE = 8
MAX_TILE_DST = 256    # dst-node tile (sublane axis of A / output rows)
MAX_TILE_SRC = 512    # src-node (contraction) tile (lane axis of A)


def _round_up(x, m):
    return ((x + m - 1) // m) * m


# ----------------------------------------------------------------------------
# Fused hetero-GraphConv-layer kernel (one dst node type, all its relations)
# ----------------------------------------------------------------------------
def _make_fused_layer_kernel(xw_first: bool, apply_act: bool):
    """Kernel factory.  Static flags:
       xw_first  : True  -> out += A @ (X @ W)   (better when f_out <= f_in)
                   False -> out += (A @ X) @ W   (better when f_in  <= f_out)
       apply_act : fuse leaky_relu into the final-store epilogue (layer 1)."""

    def _epilogue(acc_ref, b_ref, o_ref):
        y = acc_ref[...] + b_ref[...]          # bias added exactly once, in f32
        if apply_act:
            y = jnp.where(y >= 0, y, NEG_SLOPE * y)
        o_ref[...] = y.astype(o_ref.dtype)

    if xw_first:
        def kernel(a_ref, x_ref, w_ref, b_ref, o_ref, acc_ref):
            r = pl.program_id(1)
            s = pl.program_id(2)
            last = jnp.logical_and(r == pl.num_programs(1) - 1,
                                   s == pl.num_programs(2) - 1)

            @pl.when(jnp.logical_and(r == 0, s == 0))
            def _():
                acc_ref[...] = jnp.zeros_like(acc_ref)

            # A @ (X @ W): both matmuls fed bf16, accumulated in f32.
            xw = jnp.dot(x_ref[...], w_ref[...],
                         preferred_element_type=jnp.float32).astype(jnp.bfloat16)
            acc_ref[...] += jnp.dot(a_ref[...], xw,
                                    preferred_element_type=jnp.float32)

            @pl.when(last)
            def _():
                _epilogue(acc_ref, b_ref, o_ref)

        return kernel

    else:
        def kernel(a_ref, x_ref, w_ref, b_ref, o_ref, acc_ref, ax_ref):
            r = pl.program_id(1)
            s = pl.program_id(2)
            last_s = s == pl.num_programs(2) - 1
            last = jnp.logical_and(r == pl.num_programs(1) - 1, last_s)

            @pl.when(jnp.logical_and(r == 0, s == 0))
            def _():
                acc_ref[...] = jnp.zeros_like(acc_ref)

            @pl.when(s == 0)
            def _():
                ax_ref[...] = jnp.zeros_like(ax_ref)

            # (A @ X) accumulated over src tiles in f32 ...
            ax_ref[...] += jnp.dot(a_ref[...], x_ref[...],
                                   preferred_element_type=jnp.float32)

            # ... then multiplied by W once per relation.
            @pl.when(last_s)
            def _():
                acc_ref[...] += jnp.dot(ax_ref[...].astype(jnp.bfloat16), w_ref[...],
                                        preferred_element_type=jnp.float32)

            @pl.when(last)
            def _():
                _epilogue(acc_ref, b_ref, o_ref)

        return kernel


def _fused_hetero_layer_call(a_stack, x_stack, w_stack, b_sum,
                             *, tile_dst, tile_src, xw_first, apply_act):
    """pallas_call for out = sum_r (A_r_norm @ X_r) @ W_r + sum_r b_r  [f32]."""
    R, n_dst_pad, n_src_pad = a_stack.shape
    f_in_pad = x_stack.shape[2]
    f_out_pad = w_stack.shape[2]
    grid = (n_dst_pad // tile_dst, R, n_src_pad // tile_src)

    kernel = _make_fused_layer_kernel(xw_first, apply_act)

    scratch = [pltpu.VMEM((tile_dst, f_out_pad), jnp.float32)]   # output accumulator
    if not xw_first:
        scratch.append(pltpu.VMEM((tile_dst, f_in_pad), jnp.float32))  # A@X accumulator

    if xw_first:
        flops = (2 * grid[0] * R * n_src_pad * f_in_pad * f_out_pad
                 + 2 * R * n_dst_pad * n_src_pad * f_out_pad)
    else:
        flops = (2 * R * n_dst_pad * n_src_pad * f_in_pad
                 + 2 * R * n_dst_pad * f_in_pad * f_out_pad)
    bytes_accessed = (a_stack.size * a_stack.dtype.itemsize
                      + x_stack.size * x_stack.dtype.itemsize
                      + w_stack.size * w_stack.dtype.itemsize
                      + b_sum.size * 4
                      + n_dst_pad * f_out_pad * 4)

    return pl.pallas_call(
        kernel,
        out_shape=jax.ShapeDtypeStruct((n_dst_pad, f_out_pad), jnp.float32),
        grid_spec=pltpu.PrefetchScalarGridSpec(
            num_scalar_prefetch=0,
            grid=grid,
            in_specs=[
                # A_stack [R, n_dst_pad, n_src_pad] -> (tile_dst, tile_src)
                pl.BlockSpec((None, tile_dst, tile_src), lambda i, r, s: (r, i, s)),
                # X_stack [R, n_src_pad, f_in_pad]  -> (tile_src, f_in_pad)
                pl.BlockSpec((None, tile_src, f_in_pad), lambda i, r, s: (r, s, 0)),
                # W_stack [R, f_in_pad, f_out_pad]  -> (f_in_pad, f_out_pad)
                pl.BlockSpec((None, f_in_pad, f_out_pad), lambda i, r, s: (r, 0, 0)),
                # summed bias [1, f_out_pad]
                pl.BlockSpec((1, f_out_pad), lambda i, r, s: (0, 0)),
            ],
            # output block is resident across the (relation, src) reduction axes
            out_specs=pl.BlockSpec((tile_dst, f_out_pad), lambda i, r, s: (i, 0)),
            scratch_shapes=scratch,
        ),
        compiler_params=pltpu.CompilerParams(
            dimension_semantics=("parallel", "arbitrary", "arbitrary")),
        cost_estimate=pl.CostEstimate(flops=int(flops), transcendentals=0,
                                      bytes_accessed=int(bytes_accessed)),
    )(a_stack, x_stack, w_stack, b_sum)


# ----------------------------------------------------------------------------
# Wrapper: pad/stack relations per dst node type and call the fused kernel
# ----------------------------------------------------------------------------
def normalize_adj(adj):
    """DGL GraphConv norm='both': D_dst^{-1/2} A D_src^{-1/2}, degrees clamped >= 1."""
    indeg = jnp.maximum(adj.sum(axis=1), 1.0)
    outdeg = jnp.maximum(adj.sum(axis=0), 1.0)
    return adj / jnp.sqrt(indeg)[:, None] / jnp.sqrt(outdeg)[None, :]


def fused_hetero_layer(rels, adj_norm, feats, params, dst_type, n_nodes,
                       f_in, f_out, *, apply_act):
    """One HeteroGraphConv layer (aggregate='sum') for one dst node type."""
    rel_list = [r for r, (s, d) in rels.items() if d == dst_type and s in feats]
    assert rel_list, f"no relations into node type {dst_type!r}"

    n_dst = n_nodes[dst_type]
    n_src_max = max(n_nodes[rels[r][0]] for r in rel_list)

    # Tile choices (demo degenerates to one tile per axis; scales to big graphs,
    # budgeted well below v7x's 64 MiB VMEM with double-buffering).
    tile_dst = MAX_TILE_DST if n_dst >= MAX_TILE_DST else _round_up(n_dst, SUBLANE)
    n_dst_pad = _round_up(n_dst, tile_dst)
    if n_src_max >= MAX_TILE_SRC:
        tile_src = MAX_TILE_SRC
        n_src_pad = _round_up(n_src_max, tile_src)
    else:
        tile_src = _round_up(n_src_max, SUBLANE)
        n_src_pad = tile_src

    f_in_pad = _round_up(f_in, LANE)      # lane-dense operands
    f_out_pad = _round_up(f_out, LANE)    # lane-dense output stores

    a_blocks, x_blocks, w_blocks = [], [], []
    b_sum = jnp.zeros((f_out_pad,), jnp.float32)
    for r in rel_list:
        src_t, _ = rels[r]
        a = adj_norm[r]
        x = feats[src_t][:, :f_in]
        w, b = params[r]
        a_blocks.append(jnp.pad(a, ((0, n_dst_pad - a.shape[0]),
                                    (0, n_src_pad - a.shape[1]))).astype(jnp.bfloat16))
        x_blocks.append(jnp.pad(x, ((0, n_src_pad - x.shape[0]),
                                    (0, f_in_pad - x.shape[1]))).astype(jnp.bfloat16))
        w_blocks.append(jnp.pad(w, ((0, f_in_pad - w.shape[0]),
                                    (0, f_out_pad - w.shape[1]))).astype(jnp.bfloat16))
        b_sum = b_sum + jnp.pad(b.astype(jnp.float32), (0, f_out_pad - b.shape[0]))

    a_stack = jnp.stack(a_blocks)                 # [R, n_dst_pad, n_src_pad] bf16
    x_stack = jnp.stack(x_blocks)                 # [R, n_src_pad, f_in_pad]  bf16
    w_stack = jnp.stack(w_blocks)                 # [R, f_in_pad,  f_out_pad] bf16
    b_sum = b_sum.reshape(1, f_out_pad)           # [1, f_out_pad]            f32

    xw_first = f_out <= f_in                      # A@(X@W) when out dim is smaller
    out_pad = _fused_hetero_layer_call(a_stack, x_stack, w_stack, b_sum,
                                       tile_dst=tile_dst, tile_src=tile_src,
                                       xw_first=xw_first, apply_act=apply_act)
    # Trim padded dst rows; keep zero-padded feature columns (exact zeros).
    return out_pad[:n_dst]


def node_classifier_conv_forward(rels, adj, inputs, params1, params2, n_nodes,
                                 in_size, hidden_size, out_size,
                                 out_node_type='chemical'):
    adj_norm = {r: normalize_adj(a) for r, a in adj.items()}

    # conv1 (+ fused leaky_relu) for every dst node type that receives edges.
    dst_types = sorted({d for (_, d) in rels.values()})
    h = {}
    for dst in dst_types:
        h[dst] = fused_hetero_layer(rels, adj_norm, inputs, params1, dst, n_nodes,
                                    f_in=in_size, f_out=hidden_size, apply_act=True)

    # conv2: the module only returns 'chemical', so only compute that dst type.
    out_pad = fused_hetero_layer(rels, adj_norm, h, params2, out_node_type, n_nodes,
                                 f_in=hidden_size, f_out=out_size, apply_act=False)
    return out_pad[:, :out_size]


# ----------------------------------------------------------------------------
# Pure-JAX reference with matching bf16-operand / f32-accumulate math
# ----------------------------------------------------------------------------
def _ref_forward(rels, adj, inputs, params1, params2,
                 in_size, hidden_size, out_size):
    adj_norm = {r: normalize_adj(a) for r, a in adj.items()}

    def layer(feats, params, f_in, f_out, apply_act):
        xw_first = f_out <= f_in
        out, bias = {}, {}
        for r, (src_t, dst_t) in rels.items():
            if src_t not in feats:
                continue
            w, b = params[r]
            a16 = adj_norm[r].astype(jnp.bfloat16)
            x16 = feats[src_t][:, :f_in].astype(jnp.bfloat16)
            w16 = w.astype(jnp.bfloat16)
            if xw_first:
                xw = jnp.dot(x16, w16, preferred_element_type=jnp.float32).astype(jnp.bfloat16)
                y = jnp.dot(a16, xw, preferred_element_type=jnp.float32)
            else:
                ax = jnp.dot(a16, x16, preferred_element_type=jnp.float32).astype(jnp.bfloat16)
                y = jnp.dot(ax, w16, preferred_element_type=jnp.float32)
            out[dst_t] = y if dst_t not in out else out[dst_t] + y
            bias[dst_t] = b.astype(jnp.float32) if dst_t not in bias else bias[dst_t] + b
        for d in out:
            y = out[d] + bias[d][None, :]
            if apply_act:
                y = jnp.where(y >= 0, y, NEG_SLOPE * y)
            out[d] = y
        return out

    h = layer(inputs, params1, in_size, hidden_size, apply_act=True)
    h = layer(h, params2, hidden_size, out_size, apply_act=False)
    return h['chemical']


# ----------------------------------------------------------------------------
# Main: deterministic small hetero graph + parameters, run, verify
# ----------------------------------------------------------------------------
if __name__ == "__main__":
    key = jax.random.PRNGKey(0)

    n_nodes = {'chemical': 16, 'disease': 12}
    in_size, hidden_size, out_size = 8, 16, 8

    rels = {
        'interacts':  ('chemical', 'chemical'),
        'treats':     ('chemical', 'disease'),
        'treated_by': ('disease',  'chemical'),
    }
    edge_input_sizes = {rel: in_size for rel in rels}

    keys = jax.random.split(key, 16)
    adj = {}
    for i, (rel, (src_t, dst_t)) in enumerate(rels.items()):
        adj[rel] = jax.random.bernoulli(
            keys[i], p=0.3, shape=(n_nodes[dst_t], n_nodes[src_t])).astype(jnp.float32)

    inputs = {
        'chemical': jax.random.normal(keys[4], (n_nodes['chemical'], in_size), jnp.float32),
        'disease':  jax.random.normal(keys[5], (n_nodes['disease'],  in_size), jnp.float32),
    }

    def make_params(key_w, key_b, f_in, f_out):
        scale = jnp.sqrt(2.0 / (f_in + f_out))
        w = jax.random.normal(key_w, (f_in, f_out), jnp.float32) * scale
        b = jax.random.normal(key_b, (f_out,), jnp.float32) * 0.1
        return w, b

    pkeys = jax.random.split(keys[6], 4 * len(rels))
    params1, params2 = {}, {}
    for i, rel in enumerate(rels):
        params1[rel] = make_params(pkeys[4 * i], pkeys[4 * i + 1],
                                   edge_input_sizes[rel], hidden_size)
        params2[rel] = make_params(pkeys[4 * i + 2], pkeys[4 * i + 3],
                                   hidden_size, out_size)

    out = node_classifier_conv_forward(rels, adj, inputs, params1, params2, n_nodes,
                                       in_size, hidden_size, out_size)
    out = jax.block_until_ready(out)

    ref = _ref_forward(rels, adj, inputs, params1, params2,
                       in_size, hidden_size, out_size)

    assert out.shape == (n_nodes['chemical'], out_size)
    max_err = float(jnp.max(jnp.abs(out - ref)))
    assert jnp.allclose(out, ref, atol=2e-2, rtol=2e-2), \
        f"Pallas output mismatch vs reference (max abs err {max_err:.3e})"

    print("KERNEL_OK")
</pallas_src>

<mosaic_0001>
module attributes {stable_mosaic.version = 11 : i64} {
  func.func @kernel(%arg0: i32, %arg1: i32, %arg2: i32, %arg3: memref<1x16x16xbf16, #tpu.memory_space<vmem>>, %arg4: memref<1x16x128xbf16, #tpu.memory_space<vmem>>, %arg5: memref<1x128x128xbf16, #tpu.memory_space<vmem>>, %arg6: memref<1x128xf32, #tpu.memory_space<vmem>>, %arg7: memref<16x128xf32, #tpu.memory_space<vmem>>, %arg8: memref<16x128xf32, #tpu.memory_space<vmem>>, %arg9: memref<16x128xf32, #tpu.memory_space<vmem>>) attributes {dimension_semantics = [#tpu.dimension_semantics<parallel>, #tpu.dimension_semantics<arbitrary>, #tpu.dimension_semantics<arbitrary>], iteration_bounds = array<i64: 1, 2, 1>, scalar_prefetch = 0 : i64, scratch_operands = 2 : i64, tpu.core_type = #tpu.core_type<tc>, window_params = [{transform_indices = @transform_0, window_bounds = array<i64: 1, 16, 16>}, {transform_indices = @transform_1, window_bounds = array<i64: 1, 16, 128>}, {transform_indices = @transform_2, window_bounds = array<i64: 1, 128, 128>}, {pipeline_mode = #tpu.pipeline_mode<synchronous>, transform_indices = @transform_3, window_bounds = array<i64: 1, 128>}, {transform_indices = @transform_4, window_bounds = array<i64: 16, 128>}]} {
    %c0_i32 = arith.constant 0 : i32
    %0 = arith.cmpi eq, %arg2, %c0_i32 : i32
    %c1_i32 = arith.constant 1 : i32
    %1 = arith.cmpi eq, %arg1, %c1_i32 : i32
    %2 = arith.andi %1, %0 : i1
    %c0_i32_0 = arith.constant 0 : i32
    %3 = arith.cmpi eq, %arg1, %c0_i32_0 : i32
    %c0_i32_1 = arith.constant 0 : i32
    %4 = arith.cmpi eq, %arg2, %c0_i32_1 : i32
    %5 = arith.andi %3, %4 : i1
    %6 = arith.extui %5 : i1 to i32
    %c0_i32_2 = arith.constant 0 : i32
    %7 = arith.cmpi ne, %6, %c0_i32_2 : i32
    scf.if %7 {
      %cst_16 = arith.constant 0.000000e+00 : f32
      %23 = vector.broadcast %cst_16 : f32 to vector<16x128xf32>
      %c0_17 = arith.constant 0 : index
      %c0_18 = arith.constant 0 : index
      %24 = vector.load %arg8[%c0_17, %c0_18] : memref<16x128xf32, #tpu.memory_space<vmem>>, vector<16x128xf32>
      tpu.vector_store %arg8[%c0_17, %c0_18], %23 {strides = array<i32>} : memref<16x128xf32, #tpu.memory_space<vmem>>, vector<16x128xf32>,
    } else {
    }
    %c0_i32_3 = arith.constant 0 : i32
    %8 = arith.cmpi eq, %arg2, %c0_i32_3 : i32
    %9 = arith.extui %8 : i1 to i32
    %c0_i32_4 = arith.constant 0 : i32
    %10 = arith.cmpi ne, %9, %c0_i32_4 : i32
    scf.if %10 {
      %cst_16 = arith.constant 0.000000e+00 : f32
      %23 = vector.broadcast %cst_16 : f32 to vector<16x128xf32>
      %c0_17 = arith.constant 0 : index
      %c0_18 = arith.constant 0 : index
      %24 = vector.load %arg9[%c0_17, %c0_18] : memref<16x128xf32, #tpu.memory_space<vmem>>, vector<16x128xf32>
      tpu.vector_store %arg9[%c0_17, %c0_18], %23 {strides = array<i32>} : memref<16x128xf32, #tpu.memory_space<vmem>>, vector<16x128xf32>,
    } else {
    }
    %c0 = arith.constant 0 : index
    %c0_5 = arith.constant 0 : index
    %11 = vector.load %arg9[%c0, %c0_5] : memref<16x128xf32, #tpu.memory_space<vmem>>, vector<16x128xf32>
    %c0_6 = arith.constant 0 : index
    %c0_7 = arith.constant 0 : index
    %c0_8 = arith.constant 0 : index
    %12 = vector.load %arg3[%c0_6, %c0_7, %c0_8] : memref<1x16x16xbf16, #tpu.memory_space<vmem>>, vector<1x16x16xbf16>
    %13 = vector.shape_cast %12 : vector<1x16x16xbf16> to vector<16x16xbf16>
    %c0_9 = arith.constant 0 : index
    %c0_10 = arith.constant 0 : index
    %c0_11 = arith.constant 0 : index
    %14 = vector.load %arg4[%c0_9, %c0_10, %c0_11] : memref<1x16x128xbf16, #tpu.memory_space<vmem>>, vector<1x16x128xbf16>
    %15 = vector.shape_cast %14 : vector<1x16x128xbf16> to vector<16x128xbf16>
    %cst = arith.constant dense<0.000000e+00> : vector<16x128xf32>
    %16 = tpu.matmul %13, %15, %cst {dimension_numbers = #tpu.dot_dimension_numbers<[1], [0], [0], [1], [0, 0, 1, 1], [], []>} : vector<16x16xbf16>, vector<16x128xbf16>, vector<16x128xf32> -> vector<16x128xf32>
    %17 = arith.addf %11, %16 : vector<16x128xf32>
    %c0_12 = arith.constant 0 : index
    %c0_13 = arith.constant 0 : index
    %18 = vector.load %arg9[%c0_12, %c0_13] : memref<16x128xf32, #tpu.memory_space<vmem>>, vector<16x128xf32>
    tpu.vector_store %arg9[%c0_12, %c0_13], %17 {strides = array<i32>} : memref<16x128xf32, #tpu.memory_space<vmem>>, vector<16x128xf32>,
    %19 = arith.extui %0 : i1 to i32
    %c0_i32_14 = arith.constant 0 : i32
    %20 = arith.cmpi ne, %19, %c0_i32_14 : i32
    scf.if %20 {
      %c0_16 = arith.constant 0 : index
      %c0_17 = arith.constant 0 : index
      %23 = vector.load %arg8[%c0_16, %c0_17] : memref<16x128xf32, #tpu.memory_space<vmem>>, vector<16x128xf32>
      %c0_18 = arith.constant 0 : index
      %c0_19 = arith.constant 0 : index
      %24 = vector.load %arg9[%c0_18, %c0_19] : memref<16x128xf32, #tpu.memory_space<vmem>>, vector<16x128xf32>
      %25 = arith.truncf %24 : vector<16x128xf32> to vector<16x128xbf16>
      %c0_20 = arith.constant 0 : index
      %c0_21 = arith.constant 0 : index
      %c0_22 = arith.constant 0 : index
      %26 = vector.load %arg5[%c0_20, %c0_21, %c0_22] : memref<1x128x128xbf16, #tpu.memory_space<vmem>>, vector<1x128x128xbf16>
      %27 = vector.shape_cast %26 : vector<1x128x128xbf16> to vector<128x128xbf16>
      %cst_23 = arith.constant dense<0.000000e+00> : vector<16x128xf32>
      %28 = tpu.matmul %25, %27, %cst_23 {dimension_numbers = #tpu.dot_dimension_numbers<[1], [0], [0], [1], [0, 0, 1, 1], [], []>} : vector<16x128xbf16>, vector<128x128xbf16>, vector<16x128xf32> -> vector<16x128xf32>
      %29 = arith.addf %23, %28 : vector<16x128xf32>
      %c0_24 = arith.constant 0 : index
      %c0_25 = arith.constant 0 : index
      %30 = vector.load %arg8[%c0_24, %c0_25] : memref<16x128xf32, #tpu.memory_space<vmem>>, vector<16x128xf32>
      tpu.vector_store %arg8[%c0_24, %c0_25], %29 {strides = array<i32>} : memref<16x128xf32, #tpu.memory_space<vmem>>, vector<16x128xf32>,
    } else {
    }
    %21 = arith.extui %2 : i1 to i32
    %c0_i32_15 = arith.constant 0 : i32
    %22 = arith.cmpi ne, %21, %c0_i32_15 : i32
    scf.if %22 {
      %c0_16 = arith.constant 0 : index
      %c0_17 = arith.constant 0 : index
      %23 = vector.load %arg8[%c0_16, %c0_17] : memref<16x128xf32, #tpu.memory_space<vmem>>, vector<16x128xf32>
      %c0_18 = arith.constant 0 : index
      %c0_19 = arith.constant 0 : index
      %24 = vector.load %arg6[%c0_18, %c0_19] : memref<1x128xf32, #tpu.memory_space<vmem>>, vector<1x128xf32>
      %25 = vector.broadcast %24 : vector<1x128xf32> to vector<16x128xf32>
      %26 = arith.addf %23, %25 : vector<16x128xf32>
      %cst_20 = arith.constant 0.000000e+00 : f32
      %27 = vector.broadcast %cst_20 : f32 to vector<16x128xf32>
      %28 = arith.cmpf oge, %26, %27 : vector<16x128xf32>
      %cst_21 = arith.constant 0.00999999977 : f32
      %29 = vector.broadcast %cst_21 : f32 to vector<16x128xf32>
      %30 = arith.mulf %29, %26 : vector<16x128xf32>
      %31 = arith.select %28, %26, %30 : vector<16x128xi1>, vector<16x128xf32>
      %c0_22 = arith.constant 0 : index
      %c0_23 = arith.constant 0 : index
      %32 = vector.load %arg7[%c0_22, %c0_23] : memref<16x128xf32, #tpu.memory_space<vmem>>, vector<16x128xf32>
      tpu.vector_store %arg7[%c0_22, %c0_23], %31 {strides = array<i32>} : memref<16x128xf32, #tpu.memory_space<vmem>>, vector<16x128xf32>,
    } else {
    }
    return
  }
  func.func @transform_0(%arg0: i32, %arg1: i32, %arg2: i32) -> (i32, i32, i32) {
    %c0_i32 = arith.constant 0 : i32
    return %arg1, %arg0, %arg2 : i32, i32, i32
  }
  func.func @transform_1(%arg0: i32, %arg1: i32, %arg2: i32) -> (i32, i32, i32) {
    %c0_i32 = arith.constant 0 : i32
    %c0_i32_0 = arith.constant 0 : i32
    return %arg1, %arg2, %c0_i32 : i32, i32, i32
  }
  func.func @transform_2(%arg0: i32, %arg1: i32, %arg2: i32) -> (i32, i32, i32) {
    %c0_i32 = arith.constant 0 : i32
    %c0_i32_0 = arith.constant 0 : i32
    %c0_i32_1 = arith.constant 0 : i32
    return %arg1, %c0_i32, %c0_i32_0 : i32, i32, i32
  }
  func.func @transform_3(%arg0: i32, %arg1: i32, %arg2: i32) -> (i32, i32) {
    %c0_i32 = arith.constant 0 : i32
    %c0_i32_0 = arith.constant 0 : i32
    %c0_i32_1 = arith.constant 0 : i32
    return %c0_i32, %c0_i32_0 : i32, i32
  }
  func.func @transform_4(%arg0: i32, %arg1: i32, %arg2: i32) -> (i32, i32) {
    %c0_i32 = arith.constant 0 : i32
    %c0_i32_0 = arith.constant 0 : i32
    return %arg0, %c0_i32 : i32, i32
  }
}

</mosaic_0001>

<bundles_post_ra>
// kernel: tpu_custom_call.1
= control target key start
LH: loop header
LB: loop body
LE: loop exit
PB: predicated region body
PF: predicated region fallthrough
CT: control target
= control target key end

     0   :  { %s1299_s0 = inlined_call_operand.hbm [shape: bf16[2,16,16], index: 0, kind: input, shape index: {}]   ;;  %s1300_s1 = inlined_call_operand.hbm [shape: bf16[2,16,128], index: 1, kind: input, shape index: {}]   ;;  %s1301_s2 = inlined_call_operand.hbm [shape: bf16[2,128,128], index: 2, kind: input, shape index: {}]   ;;  %s1302_s3 = inlined_call_operand.vmem [shape: f32[1,128], index: 3, kind: input, shape index: {}]   ;;  %s1303_s4 = inlined_call_operand.hbm [shape: f32[16,128], index: 4, kind: output, shape index: {}]  }
   0x1   :  { %1309 = sst [smem:[#allocation14_spill]] %s1299_s0 }
   0x2   :  { %9 = vsyncpa [#allocation5], 0 }
   0x3   :  { %11 = vsyncpa [#allocation5 + $0x1], 0 }
   0x4   :  { %12 = vsyncpa [#allocation8], 0 }
   0x5   :  { %14 = vsyncpa [#allocation8 + $0x1], 0 }
   0x6   :  { %15 = vsyncpa [#allocation6], 0  ;;  %s1043_s15 = smov 0   ;;  %s1045_s16 = smov 0  }
   0x7   :  { %s1047_s17 = smov 0   ;;  %s1049_s18 = smov 0  }
   0x8   :  { %s1051_s19 = smov 0   ;;  %s1053_s20 = smov 0  }
   0x9 LB: > { %s1072_s21 = sadd.s32 4294967295, %s1005_s20   ;;  %s36_s22 = sadd.s32 1, %s1001_s19  ;;  %s1005_s20 = sphi %s1053_s20, %s21_s20   ;;  %s1001_s19 = sphi %s1051_s19, %s1324_s19   ;;  %s997_s18 = sphi %s1049_s18, %s1323_s18   ;;  %s993_s17 = sphi %s1047_s17, %s1322_s17   ;;  %s989_s16 = sphi %s1045_s16, %s1321_s16   ;;  %s985_s15 = sphi %s1043_s15, %s1320_s15  }
   0xa   : > { %p38_p0 = scmp.ge.s32.totalorder %s36_s22, 2  ;;  %s51_s23 = sadd.s32 1, %s993_s17 }
   0xb   : > { %p58_p1 = scmp.ne.s32.totalorder %s993_s17, %s989_s16  ;;  %p59_p2 = scmp.eq.s32.totalorder %s1005_s20, 0 }
   0xc   : > { %s1326_s22 = smov (%p38_p0, %s36_s22), 0  ;;  %p64_p4 = scmp.ne.s32.totalorder %s989_s16, %s985_s15 }
   0xd   : > { %p60_p3 = por %p59_p2, %p58_p1  ;;  %s44_s24 = ssub.s32 %s1001_s19, %s1326_s22 }
   0xe   : > { %p65_p5 = scmp.eq.s32.totalorder %s1072_s21, 0  ;;  %p49_p6 = scmp.eq.s32.totalorder %s44_s24, 0 }
   0xf   : > { %p762_p8 = scmp.lt.s32.totalorder %s1005_s20, 2  ;;  %s1094_s27 = sand.u32 1, %s993_s17  }
  0x10   : > { %p1085_p7 = por %p65_p5, %p64_p4  ;;  %s700_s28 = sshll.u32 %s1001_s19, 7 }
  0x11   : > { %s1091_s26 = scalar_select %p49_p6, %s993_s17, %s51_s23  }
  0x12   : > { %s1310_s25 = scalar_select %p1085_p7, 1, 0 }
  0x13   : > { %s669_s29 = sshll.u32 %s1094_s27, 3  ;;  %p1098_p9 = pnand %p762_p8, %p60_p3 }
  0x14   : > { %s216_s5 = sand.u32 1, %s1005_s20   ;;  %s1108_s8 = scalar_lea.hbm %s1300_s1, %s700_s28 }
  0x15   : > { %s220_s9 = scalar_lea.vmem [#allocation7], %s669_s29  ;;  %s1115_s11 = scalar_lea.sflag [#allocation8], %s216_s5 }
  0x16   : > { %s229_s10 = sshll.u32 %s220_s9, 4  ;;  %s831_s12 = scalar_lea.hbm %s1108_s8, 128  ;;  %s1112_s10 = int_to_ptr.vmem [resolvable:$true] %s229_s10 }
  0x17   : > { %p832_p11 = scmp.ne.s32.totalorder %s1108_s8, %s831_s12  ;;  %p1121_p12 = pneg %p1098_p9 }
  0x18   : > { %s836_s23 = scalar_lea.hbm %s1300_s1, 256  ;;  %p837_p1 = scmp.lt.u32.totalorder %s1108_s8, %s1300_s1 }
  0x19   : > { %p834_p13 = pnand %p1121_p12, %p832_p11  ;;  %p838_p2 = scmp.lt.u32.totalorder %s836_s23, %s831_s12 }
  0x1a   : > { %p840_p4 = scmp.lt.u32.totalorder %s831_s12, %s1108_s8 }
  0x1b   : > { %p835_p0 = pneg %p834_p13  ;;  %p839_p3 = por %p838_p2, %p837_p1 }
  0x1d   : > { %p841_p5 = por %p840_p4, %p839_p3 }
  0x1f   : > { %p842_p6 = pnand %p841_p5, %p835_p0 }
  0x21   : > { %845 = shalt.err (!%p842_p6)
}
  0x22   : > { %s846_s5 = scalar_lea.vmem %s1112_s10, 128  ;;  %s1007_s7 = smov [#allocation7]  }
  0x23   : > { %p847_p8 = scmp.ne.s32.totalorder %s1112_s10, %s846_s5  ;;  %s851_s9 = sshll.u32 %s1007_s7, 4  ;;  %s852_s9 = int_to_ptr.vmem [resolvable:$false] %s851_s9 }
  0x24   : > { %s853_s14 = scalar_lea.vmem %s852_s9, 256  ;;  %p854_p10 = scmp.lt.s32.totalorder %s1112_s10, %s852_s9 }
  0x25   : > { %p849_p11 = pnand %p847_p8, %p1121_p12  ;;  %p855_p7 = scmp.lt.s32.totalorder %s853_s14, %s846_s5 }
  0x27   : > { %p850_p13 = pneg %p849_p11  ;;  %p856_p1 = por %p855_p7, %p854_p10 }
  0x29   : > { %p857_p2 = pnand %p856_p1, %p850_p13 }
  0x2b   : > { %860 = shalt.err (!%p857_p2)
}
  0x2c   : > { %s1305_s12 = smov 64   ;;  %s1307_s15 = smov 4  }
  0x2d   : > { %758 = dma.hbm_to_vmem [thread:$0]  (!%p1098_p9), %s1108_s8, 128, %s1112_s10, %s1115_s11, %s1305_s12, %s1305_s12, %s1307_s15  }
  0x2e   : > { %p258_p7 = scmp.lt.s32.totalorder %s1005_s20, 3  ;;  %p1313_p10 = scmp.ge.s32.totalorder %s1005_s20, 1 }
  0x2f   : > { %s1315_s0 = sld [smem:[#allocation14_spill]]  ;;  %s196_s7 = scalar_lea.vmem [#allocation4], %s669_s29 }
  0x30   : > { %p1151_p0 = pnand %p1313_p10, %p258_p7  ;;  %s206_s9 = sshll.u32 %s196_s7, 4  ;;  %s1164_s9 = int_to_ptr.vmem [resolvable:$true] %s206_s9 }
  0x31   : > { %s675_s8 = sshll.u32 %s1094_s27, 6  ;;  %s193_s10 = scalar_lea.sflag [#allocation5], %s1094_s27 }
  0x32   : > { %s1314_s23 = scalar_select %p1151_p0, 1, 0 }
  0x35   : > { %s1160_s5 = scalar_lea.hbm %s1315_s0, %s700_s28  ;;  %s866_s28 = scalar_lea.hbm %s1315_s0, 256 }
  0x36   : > { %s861_s14 = scalar_lea.hbm %s1160_s5, 128  ;;  %p867_p6 = scmp.lt.u32.totalorder %s1160_s5, %s1315_s0 }
  0x37   : > { %p862_p3 = scmp.ne.s32.totalorder %s1160_s5, %s861_s14  ;;  %p868_p8 = scmp.lt.u32.totalorder %s866_s28, %s861_s14 }
  0x38   : > { %p870_p13 = scmp.lt.u32.totalorder %s861_s14, %s1160_s5 }
  0x39   : > { %p864_p4 = pnand %p862_p3, %p1121_p12  ;;  %p869_p11 = por %p868_p8, %p867_p6 }
  0x3b   : > { %p865_p5 = pneg %p864_p4  ;;  %p871_p1 = por %p870_p13, %p869_p11 }
  0x3d   : > { %p872_p2 = pnand %p871_p1, %p865_p5 }
  0x3f   : > { %875 = shalt.err (!%p872_p2)
}
  0x40   : > { %s876_s29 = scalar_lea.vmem %s1164_s9, 128  ;;  %s1010_s12 = smov [#allocation4]  }
  0x41   : > { %p877_p7 = scmp.ne.s32.totalorder %s1164_s9, %s876_s29  ;;  %s881_s7 = sshll.u32 %s1010_s12, 4  ;;  %s882_s7 = int_to_ptr.vmem [resolvable:$false] %s881_s7 }
  0x42   : > { %s883_s15 = scalar_lea.vmem %s882_s7, 256  ;;  %p884_p4 = scmp.lt.s32.totalorder %s1164_s9, %s882_s7 }
  0x43   : > { %p879_p10 = pnand %p877_p7, %p1121_p12  ;;  %p885_p0 = scmp.lt.s32.totalorder %s883_s15, %s876_s29 }
  0x45   : > { %p880_p3 = pneg %p879_p10  ;;  %p886_p6 = por %p885_p0, %p884_p4 }
  0x47   : > { %p887_p8 = pnand %p886_p6, %p880_p3 }
  0x49   : > { %890 = shalt.err (!%p887_p8)
}
  0x4a   : > { %s1316_s14 = smov 4   ;;  %s1317_s24 = smov 64  }
  0x4b   : > { %755 = dma.hbm_to_vmem [thread:$0]  (!%p1098_p9), %s1160_s5, 128, %s1164_s9, %s193_s10, %s1317_s24, %s1317_s24, %s1316_s14  }
  0x4c   : > { %s702_s28 = sshll.u32 %s1001_s19, 10  ;;  %s243_s7 = scalar_lea.vmem [#allocation9], %s675_s8 }
  0x4d   : > { %s1198_s29 = scalar_lea.hbm %s1301_s2, %s702_s28  ;;  %s250_s15 = sshll.u32 %s243_s7, 4  ;;  %s1202_s15 = int_to_ptr.vmem [resolvable:$true] %s250_s15 }
  0x4e   : > { %s891_s0 = scalar_lea.hbm %s1198_s29, 1024  ;;  %s896_s10 = scalar_lea.hbm %s1301_s2, 2048 }
  0x4f   : > { %p892_p0 = scmp.ne.s32.totalorder %s1198_s29, %s891_s0  ;;  %p897_p13 = scmp.lt.u32.totalorder %s1198_s29, %s1301_s2 }
  0x50   : > { %p898_p1 = scmp.lt.u32.totalorder %s896_s10, %s891_s0  ;;  %p900_p7 = scmp.lt.u32.totalorder %s891_s0, %s1198_s29 }
  0x51   : > { %p894_p5 = pnand %p892_p0, %p1121_p12 }
  0x52   : > { %p899_p2 = por %p898_p1, %p897_p13 }
  0x53   : > { %p895_p11 = pneg %p894_p5 }
  0x54   : > { %p901_p10 = por %p900_p7, %p899_p2 }
  0x56   : > { %p902_p3 = pnand %p901_p10, %p895_p11 }
  0x58   : > { %905 = shalt.err (!%p902_p3)
}
  0x59   : > { %s906_s27 = scalar_lea.vmem %s1202_s15, 1024  ;;  %s1011_s8 = smov [#allocation9]  }
  0x5a   : > { %p907_p4 = scmp.ne.s32.totalorder %s1202_s15, %s906_s27  ;;  %s911_s12 = sshll.u32 %s1011_s8, 4  ;;  %s912_s12 = int_to_ptr.vmem [resolvable:$false] %s911_s12 }
  0x5b   : > { %s913_s7 = scalar_lea.vmem %s912_s12, 2048  ;;  %p914_p0 = scmp.lt.s32.totalorder %s1202_s15, %s912_s12 }
  0x5c   : > { %p909_p6 = pnand %p907_p4, %p1121_p12  ;;  %p915_p5 = scmp.lt.s32.totalorder %s913_s7, %s906_s27 }
  0x5e   : > { %p910_p8 = pneg %p909_p6  ;;  %p916_p13 = por %p915_p5, %p914_p0 }
  0x60   : > { %p917_p1 = pnand %p916_p13, %p910_p8 }
  0x62   : > { %920 = shalt.err (!%p917_p1)
}
  0x63   : > { %761 = dma.hbm_to_vmem [thread:$0]  (!%p1098_p9), %s1198_s29, 1024, %s1202_s15, %s1115_s11, %s1317_s24, %s1317_s24, %s1316_s14  }
  0x64   : > { %p1318_p12 = scmp.ne.s32.totalorder %s1314_s23, 0 }
  0x65   : > { %s264_s0 = sand.u32 (!%p1318_p12), 1, %s989_s16   ;;  %p1319_p11 = scmp.ne.s32.totalorder (!%p1318_p12), %s1310_s25, 0 }
  0x66   : > { %262 = sbr.rel (%p1318_p12) target bundleno = 600 (0x258), region = 36  ;;  %s679_s13 = sshll.u32 (!%p1318_p12), %s264_s0, 3 }
  0x67   : > { %s265_s5 = scalar_lea.sflag (!%p1318_p12), [#allocation5], %s264_s0  ;;  %s268_s9 = scalar_lea.vmem (!%p1318_p12), [#allocation4], %s679_s13 }
  0x6d   : > { %972 = dma.done.wait (%p1319_p11), %s265_s5, 128  }
  0x6e   : > { %974 = vsyncadd (%p1319_p11), %s265_s5, 4294967168  ;;  %s273_s30 = sand.u32 1, %s1072_s21   ;;  %s277_s28 = scalar_lea.vmem [#allocation7], %s679_s13 }
  0x6f   : > { %s274_s10 = scalar_lea.sflag [#allocation8], %s273_s30 }
  0x70   : > { %976 = dma.done.wait (%p1319_p11), %s274_s10, 1152  }
  0x71   : > { %978 = vsyncadd (%p1319_p11), %s274_s10, 4294966144  ;;  %s681_s11 = sshll.u32 %s264_s0, 6  ;;  %p321_p9 = scmp.eq.s32.totalorder %s997_s18, 1 }
  0x72   : > { %p324_p2 = scmp.eq.s32.totalorder %s997_s18, 0  ;;  %s1243_s23 = scalar_lea.vmem [#allocation9], %s681_s11 }
  0x73   : > { %v1012_v0 = vmov (%p324_p2), 0.0  }
  0x74   : > { %328 = sbr.rel (!%p324_p2) target bundleno = 123 (0x7b), region = 52  ;;  %329 = vst [vmem:[#allocation2] sm:$0xff] (%p324_p2), %v1012_v0  ;;  %330 = vst [vmem:[#allocation2 + $0x8] sm:$0xff] (%p324_p2), %v1012_v0 }
  0x7b PF: > { %v821_v1 = vld [vmem:[%s277_s28] sm:$0xff]   ;;  %v1013_v2 = vmov 0.0   ;;  %v822_v3 = vld [vmem:[%s268_s9] sm:$0xff]   ;;  %vm1014_vm0 = vmmov 0   ;;  %vm353_vm1 = vcmask 130048  }
  0x7c   : > { %716 = vmatprep.subr.bf16.mxu0 %v1013_v2  ;;  %722 = vmatprep.subr.bf16.mxu1 %v1013_v2  ;;  %v823_v4 = vld [vmem:[%s1243_s23] sm:$0xff]   ;;  %v824_v5 = vld [vmem:[%s1243_s23 + $0x8] sm:$0xff]   ;;  %v825_v6 = vld [vmem:[%s1243_s23 + $0x10] sm:$0xff]  }
  0x7d   : > { %717 = vmatpush3.bf16.msra.mxu0 %v821_v1  ;;  %718 = vmatprep.mubr.msk.bf16.mxu0 %vm1014_vm0, %v1013_v2  ;;  %v826_v7 = vld [vmem:[%s1243_s23 + $0x18] sm:$0xff]   ;;  %v827_v8 = vld [vmem:[%s1243_s23 + $0x20] sm:$0xff]   ;;  %v828_v9 = vld [vmem:[%s1243_s23 + $0x28] sm:$0xff]  }
  0x7e   : > { %738 = vmatprep.mubr.msk.bf16.mxu1 %vm1014_vm0, %v1013_v2  ;;  %723 = vmatpush3.bf16.msra.mxu1 %v823_v4  ;;  %v829_v10 = vld [vmem:[%s1243_s23 + $0x30] sm:$0xff]   ;;  %v830_v11 = vld [vmem:[%s1243_s23 + $0x38] sm:$0xff]  }
  0x7f   : > { %724 = vmatprep.subr.bf16.mxu1 %v1013_v2  ;;  %v405_v17 = vld [vmem:[#allocation2] sm:$0xff]  ;;  %v406_v19 = vld [vmem:[#allocation2 + $0x8] sm:$0xff] }
  0x80   : > { %719 = vmatmul.mubr.msk.bf16.vlgmr.msra.gmra.mrb[0].mxu0 %vm353_vm1, %v822_v3  ;;  %v695_v26 = vld [vmem:[%s1302_s3] ss:$0 sm:$0xff] (%p321_p9) }
  0x82   : > { %725 = vmatpush3.bf16.msra.mxu1 %v824_v5 }
  0x83   : > { %726 = vmatprep.subr.bf16.mxu1 %v1013_v2 }
  0x86   : > { %727 = vmatpush3.bf16.msra.mxu1 %v825_v6 }
  0x87   : > { %728 = vmatprep.subr.bf16.mxu1 %v1013_v2 }
  0x8a   : > { %729 = vmatpush3.bf16.msra.mxu1 %v826_v7 }
  0x8b   : > { %730 = vmatprep.subr.bf16.mxu1 %v1013_v2 }
  0x8e   : > { %731 = vmatpush3.bf16.msra.mxu1 %v827_v8 }
  0x8f   : > { %732 = vmatprep.subr.bf16.mxu1 %v1013_v2 }
  0x92   : > { %733 = vmatpush3.bf16.msra.mxu1 %v828_v9 }
  0x93   : > { %734 = vmatprep.subr.bf16.mxu1 %v1013_v2 }
  0x96   : > { %735 = vmatpush3.bf16.msra.mxu1 %v829_v10 }
  0x97   : > { %736 = vmatprep.subr.bf16.mxu1 %v1013_v2 }
  0x9a   : > { %737 = vmatpush3.bf16.msra.mxu1 %v830_v11 }
 0x153   : > { %v391_v12 = vpop.f32.mrb[0].mxu0 }
 0x154   : > { %v720_v13 = vpop.f32.mrb[1].mxu0 }
 0x155   : > { %v394_v14 = vpop.f32.mrb[2].mxu0 }
 0x156   : > { %v409_v15 = vpack.c.bf16 %v394_v14, %v391_v12  ;;  %v721_v16 = vpop.f32.mrb[3].mxu0 }
 0x158   : > { %739 = vmatmul.mubr.bf16.vlgmr.msra.gmra.mrb[0].mxu1 %v409_v15 }
 0x22a   : > { %520 = sbr.rel (!%p321_p9) target bundleno = 574 (0x23e), region = 64 }
 0x22b   : > { %v508_v18 = vpop.f32.mrb[0].mxu1 }
 0x22c   : > { %v515_v20 = vadd.f32 %v508_v18, %v405_v17  ;;  %v740_v21 = vpop.f32.mrb[1].mxu1 }
 0x22d   : > { %v511_v22 = vpop.f32.mrb[2].mxu1 }
 0x22e   : > { %517 = vst [vmem:[#allocation2] sm:$0xff] %v515_v20  ;;  %v516_v23 = vadd.f32 %v511_v22, %v406_v19  ;;  %v741_v24 = vpop.f32.mrb[3].mxu1 }
 0x230   : > { %518 = vst [vmem:[#allocation2 + $0x8] sm:$0xff] %v516_v23 }
 0x235   : > { %v521_v25 = vld [vmem:[#allocation2] sm:$0xff] }
 0x236   : > { %v530_v28 = vadd.f32 %v695_v26, %v521_v25 }
 0x237   : > { %v522_v27 = vld [vmem:[#allocation2 + $0x8] sm:$0xff] }
 0x238   : > { %v531_v29 = vadd.f32 %v695_v26, %v522_v27  ;;  %vm532_vm2 = vcmp.ge.f32.partialorder %v530_v28, 0.0  ;;  %v534_v30 = vmul.f32 0.01, %v530_v28 }
 0x23a   : > { %vm533_vm3 = vcmp.ge.f32.partialorder %v531_v29, 0.0  ;;  %v535_v31 = vmul.f32 0.01, %v531_v29  ;;  %v536_v32 = vsel %vm532_vm2, %v530_v28, %v534_v30 }
 0x23b   : > { %538 = vst [vmem:[#allocation10] sm:$0xff] %v536_v32 }
 0x23c   : > { %v537_v33 = vsel %vm533_vm3, %v531_v29, %v535_v31 }
 0x23d   : > { %539 = vst [vmem:[#allocation10 + $0x8] sm:$0xff] %v537_v33 }
 0x23e PF: > { %p763_p7 = scmp.eq.s32.totalorder %s1072_s21, 1  ;;  %s1015_s18 = smov [#allocation10]  }
 0x23f   : > { %s549_s24 = sshll.u32 %s1015_s18, 4  ;;  %s550_s24 = int_to_ptr.vmem [resolvable:$true] %s549_s24 }
 0x240   : > { %s921_s29 = scalar_lea.vmem %s550_s24, 256  ;;  %p928_p6 = scmp.lt.s32.totalorder %s550_s24, %s550_s24 }
 0x241   : > { %p922_p10 = scmp.ne.s32.totalorder %s550_s24, %s921_s29  ;;  %p929_p8 = scmp.lt.s32.totalorder %s921_s29, %s921_s29 }
 0x243   : > { %p923_p3 = pnand %p922_p10, %p763_p7  ;;  %p930_p0 = por %p929_p8, %p928_p6 }
 0x245   : > { %p924_p4 = pneg %p923_p3 }
 0x247   : > { %p931_p5 = pnand %p930_p0, %p924_p4 }
 0x249   : > { %934 = shalt.err (!%p931_p5)
}
 0x24a   : > { %s935_s27 = scalar_lea.hbm %s1303_s4, 256 }
 0x24b   : > { %p936_p13 = scmp.ne.s32.totalorder %s1303_s4, %s935_s27  ;;  %p941_p11 = scmp.lt.u32.totalorder %s935_s27, %s1303_s4 }
 0x24d   : > { %p937_p1 = pnand %p936_p13, %p763_p7 }
 0x24f   : > { %p938_p12 = pneg %p937_p1 }
 0x251   : > { %p943_p9 = pnand %p941_p11, %p938_p12 }
 0x253   : > { %946 = shalt.err (!%p943_p9)
}
 0x254   : > { %s1016_s13 = smov 128   ;;  %s1017_s5 = smov 8  }
 0x255   : > { %749 = dma.vmem_to_hbm [thread:$0]  (%p763_p7), %s550_s24, 256, %s1303_s4, [#allocation6], %s1016_s13, %s1016_s13, %s1017_s5  }
 0x256   : > { %980 = dma.done.wait (%p763_p7), [#allocation6], 256  }
 0x257   : > { %982 = vsyncadd (%p763_p7), [#allocation6], 4294967040 }
 0x258 PF: > { %s21_s20 = sadd.s32 1, %s1005_s20   ;;  %s1320_s15 = smov %s989_s16 }
 0x259   : > { %p18_p2 = scmp.ge.s32.totalorder %s21_s20, 4   ;;  %s1321_s16 = smov %s993_s17 }
 0x25a   : > { %s1322_s17 = smov %s1091_s26  ;;  %s1323_s18 = smov %s1001_s19 }
 0x25b   : > { %s1324_s19 = smov %s1326_s22  ;;  %20 = sbr.rel (!%p18_p2) target bundleno = 9 (0x9), region = 114 }
 0x262   :  { %565 = vsyncpa [#allocation5], 1 }
 0x263   :  { %567 = vsyncpa [#allocation5 + $0x1], 1 }
 0x264   :  { %568 = vsyncpa [#allocation8], 1 }
 0x265   :  { %570 = vsyncpa [#allocation8 + $0x1], 1 }
 0x266   :  { %571 = vsyncpa [#allocation6], 1 }
 0x267   :  { %573 = vsyncpa [#allocation6 + $0x1], 1 }

</bundles_post_ra>
